<compile_context>
chip_gen: v5e
topology: v5e:2x2
jax: 0.10.0
libtpu: 0.0.40
codegen_flags: <defaults>
</compile_context>

<pallas_src>
import jax
import jax.numpy as jnp
from jax.experimental import pallas as pl
from jax.experimental.pallas import tpu as pltpu


_LANE = 128
# Minimum sublane-block multiple by element byte width: sub-32-bit dtypes pack
# along sublanes (f32 -> 8, bf16/f16 -> 16, int8/fp8 -> 32).
_SUBLANE_BY_ITEMSIZE = {4: 8, 2: 16, 1: 32}

_MAX_BLOCK_BYTES = 4 * 1024 * 1024   # v7x-safe cap per buffer
_MIN_BLOCK_BYTES = 1 * 1024 * 1024   # keep ~0.35us/step overhead <20% of HBM time
_TARGET_STEPS = 8                    # >= 4 steps per TensorCore on v7x (2 TCs)


def _relu_kernel(x_ref, o_ref):
    # Pure VPU elementwise max(x, 0); no explicit zero tile is materialized.
    o_ref[...] = jnp.maximum(x_ref[...], 0)


def _plan(n: int, itemsize: int):
    """Pick a copy-free lane-dense 2D view (rows, lanes) of the flat tensor and a
    row-block size / grid length. Returns (rows, lanes, block_rows, grid) or None
    (caller falls back to plain XLA)."""
    sub = _SUBLANE_BY_ITEMSIZE.get(itemsize, 8)
    total_bytes = n * itemsize

    # Candidate lane widths (row-major reshape => zero data movement).
    cands = [l for l in (512, 256, _LANE) if n % l == 0]
    if not cands:
        return None  # ragged: XLA elementwise is already at the HBM roofline

    # Prefer a view whose row count is sublane-aligned (widest lanes first).
    aligned = [l for l in cands if (n // l) % sub == 0]
    if aligned:
        lanes = aligned[0]
        rows = n // lanes
        bytes_per_row = lanes * itemsize
        max_block_rows = max(sub, (_MAX_BLOCK_BYTES // bytes_per_row) // sub * sub)

        # Target ~4-8 grid steps (pipelined DMA overlap; 2-TC sharding on v7x),
        # but never shrink blocks below ~1 MiB nor grow them past 4 MiB.
        steps_cap = max(1, total_bytes // _MIN_BLOCK_BYTES)     # block >= ~1 MiB
        steps_floor = pl.cdiv(total_bytes, _MAX_BLOCK_BYTES)    # block <= 4 MiB
        target = max(min(_TARGET_STEPS, steps_cap), steps_floor)
        if target == 1 and total_bytes >= _MIN_BLOCK_BYTES and rows % (2 * sub) == 0:
            target = 2                      # medium tensors: at least 2 steps
        if target > 1 and target % 2:
            target += 1                     # even grid => balanced across 2 TCs

        block_rows = pl.cdiv(pl.cdiv(rows, target), sub) * sub  # balanced blocks
        block_rows = max(sub, min(block_rows, max_block_rows, rows))
        grid = pl.cdiv(rows, block_rows)    # partial last block is clipped safely
        return rows, lanes, block_rows, grid

    # No sublane-aligned view: a single full-extent block is still legal
    # (block dims equal to the full array dims) if the whole tensor fits.
    lanes = cands[0]
    rows = n // lanes
    if rows * lanes * itemsize <= _MAX_BLOCK_BYTES:
        return rows, lanes, rows, 1
    return None


def relu_pallas(x: jax.Array, *, inplace: bool = False) -> jax.Array:
    """ReLU over an arbitrary-shaped array via a lane-dense Pallas TPU kernel."""
    orig_shape = x.shape
    n = x.size
    if n == 0:
        return x

    itemsize = jnp.dtype(x.dtype).itemsize
    plan = _plan(n, itemsize)
    if plan is None:
        # Ragged / oversized-unaligned sizes: plain XLA elementwise is already
        # HBM-roofline for a pure ReLU and avoids any pad-copy round trip.
        return jnp.maximum(x, 0)

    rows, lanes, block_rows, grid = plan
    x2d = jnp.reshape(x, (rows, lanes))  # row-major reshape: no data movement

    block_bytes = block_rows * lanes * itemsize
    # Cover double-buffered input + output plus headroom; explicit so v5e's
    # smaller default scoped-VMEM limit is never the constraint (<= ~20 MiB).
    vmem_limit = int(max(16 * 1024 * 1024, 4 * block_bytes + (4 << 20)))

    extra_kwargs = {}
    if inplace:
        # Mirrors torch's ReLU(inplace=True). Only beneficial when the caller
        # donates the input; otherwise XLA inserts a protective copy.
        extra_kwargs["input_output_aliases"] = {0: 0}

    out2d = pl.pallas_call(
        _relu_kernel,
        out_shape=jax.ShapeDtypeStruct((rows, lanes), x.dtype),
        grid_spec=pltpu.PrefetchScalarGridSpec(
            num_scalar_prefetch=0,
            grid=(grid,),
            in_specs=[pl.BlockSpec((block_rows, lanes), lambda i: (i, 0))],
            out_specs=pl.BlockSpec((block_rows, lanes), lambda i: (i, 0)),
        ),
        compiler_params=pltpu.CompilerParams(
            dimension_semantics=("parallel",),
            vmem_limit_bytes=vmem_limit,
        ),
        cost_estimate=pl.CostEstimate(
            flops=n, transcendentals=0, bytes_accessed=2 * n * itemsize
        ),
        **extra_kwargs,
    )(x2d)

    return jnp.reshape(out2d, orig_shape)


_relu_jit = jax.jit(relu_pallas, static_argnames=("inplace",))


class M:
    """JAX/Pallas equivalent of the PyTorch module (ReLU only, no params)."""

    def __call__(self, x21: jax.Array) -> jax.Array:
        x22 = _relu_jit(x21)
        return x22


if __name__ == "__main__":
    model = M()

    # Small shape (single-block Pallas path).
    x_small = jax.random.normal(jax.random.PRNGKey(0), (2, 4, 16, 16), dtype=jnp.float32)
    out_small = jax.block_until_ready(model(x_small))
    assert out_small.shape == x_small.shape and out_small.dtype == x_small.dtype
    assert bool(jnp.allclose(out_small, jnp.maximum(x_small, 0.0))), \
        "Pallas ReLU mismatch vs reference (small shape)"

    # Spec shape from the original PyTorch module: NCHW (1, 256, 56, 56), f32
    # (~3.2 MB) -> exercises the multi-step pipelined path (grid of 4).
    x21 = jax.random.normal(jax.random.PRNGKey(1), (1, 256, 56, 56), dtype=jnp.float32)
    out = jax.block_until_ready(model(x21))
    assert out.shape == x21.shape and out.dtype == x21.dtype
    assert bool(jnp.allclose(out, jnp.maximum(x21, 0.0))), \
        "Pallas ReLU mismatch vs reference (spec shape)"

    # Ragged shape (size not a multiple of 128) -> XLA fallback path.
    x_ragged = jax.random.normal(jax.random.PRNGKey(2), (3, 5, 7), dtype=jnp.float32)
    out_ragged = jax.block_until_ready(model(x_ragged))
    assert bool(jnp.allclose(out_ragged, jnp.maximum(x_ragged, 0.0))), \
        "Fallback ReLU mismatch vs reference (ragged shape)"

    print("KERNEL_OK")
</pallas_src>

<mosaic_0001>
module attributes {stable_mosaic.version = 11 : i64} {
  func.func @_relu_kernel(%arg0: i32, %arg1: memref<8x256xf32, #tpu.memory_space<vmem>>, %arg2: memref<8x256xf32, #tpu.memory_space<vmem>>) attributes {dimension_semantics = [#tpu.dimension_semantics<parallel>], iteration_bounds = array<i64: 1>, scalar_prefetch = 0 : i64, scratch_operands = 0 : i64, tpu.core_type = #tpu.core_type<tc>, window_params = [{transform_indices = @transform_0, window_bounds = array<i64: 8, 256>}, {transform_indices = @transform_1, window_bounds = array<i64: 8, 256>}]} {
    %c0 = arith.constant 0 : index
    %c0_0 = arith.constant 0 : index
    %0 = vector.load %arg1[%c0, %c0_0] : memref<8x256xf32, #tpu.memory_space<vmem>>, vector<8x256xf32>
    %cst = arith.constant 0.000000e+00 : f32
    %1 = vector.broadcast %cst : f32 to vector<8x256xf32>
    %2 = arith.maximumf %0, %1 : vector<8x256xf32>
    %c0_1 = arith.constant 0 : index
    %c0_2 = arith.constant 0 : index
    %3 = vector.load %arg2[%c0_1, %c0_2] : memref<8x256xf32, #tpu.memory_space<vmem>>, vector<8x256xf32>
    tpu.vector_store %arg2[%c0_1, %c0_2], %2 {strides = array<i32>} : memref<8x256xf32, #tpu.memory_space<vmem>>, vector<8x256xf32>,
    return
  }
  func.func @transform_0(%arg0: i32) -> (i32, i32) {
    %c0_i32 = arith.constant 0 : i32
    %c0_i32_0 = arith.constant 0 : i32
    return %arg0, %c0_i32 : i32, i32
  }
  func.func @transform_1(%arg0: i32) -> (i32, i32) {
    %c0_i32 = arith.constant 0 : i32
    %c0_i32_0 = arith.constant 0 : i32
    return %arg0, %c0_i32 : i32, i32
  }
}

</mosaic_0001>

<bundles_post_ra>
// kernel: relu_pallas.1
= control target key start
LH: loop header
LB: loop body
LE: loop exit
PB: predicated region body
PF: predicated region fallthrough
CT: control target
= control target key end

     0   :  { %s40_s0 = inlined_call_operand.vmem [shape: f32[8,256], index: 0, kind: input, shape index: {}]   ;;  %s41_s1 = inlined_call_operand.vmem [shape: f32[8,256], index: 1, kind: output, shape index: {}]  }
   0x1   :  { %v8_v0 = vld [vmem:[%s40_s0] sm:$0xff]  ;;  %v9_v1 = vld [vmem:[%s40_s0 + $0x8] sm:$0xff] }
   0x2   :  { %v10_v2 = vmax.f32 %v8_v0, 0.0  ;;  %v11_v3 = vmax.f32 %v9_v1, 0.0 }
   0x4   :  { %12 = vst [vmem:[%s41_s1] sm:$0xff] %v10_v2 }
   0x5   :  { %13 = vst [vmem:[%s41_s1 + $0x8] sm:$0xff] %v11_v3 }

</bundles_post_ra>
